<compile_context>
chip_gen: v6e
topology: v6e:2x2x1
jax: 0.10.0
libtpu: 0.0.40
codegen_flags: <defaults>
</compile_context>

<pallas_src>
import functools

import jax
import jax.numpy as jnp
from jax.experimental import pallas as pl
from jax.experimental.pallas import tpu as pltpu


def _round_up(n, m):
    return ((n + m - 1) // m) * m


def _mlp_kernel(x_ref, w1_ref, b1_ref, w2_ref, b2_ref, w3_ref, b3_ref, o_ref):
    # Batch on sublanes, features on lanes.  Each layer contracts the feature
    # (last) axis of both operands: y = x @ W^T, with the MXU doing the
    # implicit RHS transpose.  f32 accumulation throughout.
    dn = (((1,), (1,)), ((), ()))
    x = x_ref[...]                                                    # [tb, 2D]
    h1 = jax.lax.dot_general(x, w1_ref[...], dn,
                             preferred_element_type=jnp.float32)      # [tb, H1]
    h1 = jnp.maximum(h1 + b1_ref[...], 0.0)
    h2 = jax.lax.dot_general(h1, w2_ref[...], dn,
                             preferred_element_type=jnp.float32)      # [tb, H2]
    h2 = jnp.maximum(h2 + b2_ref[...], 0.0)
    out = jax.lax.dot_general(h2, w3_ref[...], dn,
                              preferred_element_type=jnp.float32)     # [tb, D]
    o_ref[...] = (out + b3_ref[...]).astype(o_ref.dtype)


@functools.partial(jax.jit, static_argnames=("batch_tile",))
def imputation_nn_forward(x, params, *, batch_tile=4096):
    """x: [B, 2*original_dim] float32.  Returns [B, original_dim].

    Weights are stored PyTorch-style as [out_features, in_features];
    biases as [1, out_features].
    """
    w1, b1, w2, b2, w3, b3 = params
    B, in_dim = x.shape
    h1_dim = w1.shape[0]
    h2_dim = w2.shape[0]
    original_dim = w3.shape[0]

    # Batch tile: multiple of 128 (sublane-aligned), capped at batch_tile,
    # and capped at ~ceil(B/2) (rounded up to 128) so moderate batches still
    # yield >= 2 grid steps for v7x's two TensorCores.  Small batches collapse
    # to a single 128-row tile; the last partial tile is masked by Pallas.
    half_b = _round_up(max(1, -(-B // 2)), 128)
    tb = max(128, min(_round_up(batch_tile, 128), half_b))
    grid = (pl.cdiv(B, tb),)

    itemsize = x.dtype.itemsize
    flops = 2 * B * (in_dim * h1_dim + h1_dim * h2_dim + h2_dim * original_dim)
    bytes_accessed = (B * in_dim * itemsize
                      + B * original_dim * itemsize
                      + sum(int(p.size) * p.dtype.itemsize for p in params))
    cost_estimate = pl.CostEstimate(flops=flops,
                                    transcendentals=0,
                                    bytes_accessed=bytes_accessed)

    full = lambda shape: pl.BlockSpec(shape, lambda i: (0, 0))  # resident weights/biases

    out = pl.pallas_call(
        _mlp_kernel,
        out_shape=jax.ShapeDtypeStruct((B, original_dim), x.dtype),
        grid_spec=pltpu.PrefetchScalarGridSpec(
            num_scalar_prefetch=0,
            grid=grid,
            in_specs=[
                # x tile streamed in its natural layout; default double-buffering
                # fully hides this DMA at multi-MB tile sizes.
                pl.BlockSpec((tb, in_dim), lambda i: (i, 0)),
                full((h1_dim, in_dim)),        # W1 [H1, 2D]
                full((1, h1_dim)),             # b1 [1, H1]
                full((h2_dim, h1_dim)),        # W2 [H2, H1]
                full((1, h2_dim)),             # b2 [1, H2]
                full((original_dim, h2_dim)),  # W3 [D, H2]
                full((1, original_dim)),       # b3 [1, D]
            ],
            out_specs=pl.BlockSpec((tb, original_dim), lambda i: (i, 0)),
        ),
        compiler_params=pltpu.CompilerParams(
            dimension_semantics=("parallel",),
        ),
        cost_estimate=cost_estimate,
    )(x, w1, b1, w2, b2, w3, b3)

    return out


def init_params(key, original_dim, hidden_dim1=128, hidden_dim2=64):
    """PyTorch nn.Linear default init: U[-1/sqrt(fan_in), +1/sqrt(fan_in)].
    Weights stored as [out_features, in_features]; biases as [1, out_features]."""
    input_dim = original_dim * 2
    dims = [(input_dim, hidden_dim1), (hidden_dim1, hidden_dim2), (hidden_dim2, original_dim)]
    params = []
    keys = jax.random.split(key, 2 * len(dims))
    for idx, (fan_in, fan_out) in enumerate(dims):
        bound = 1.0 / (fan_in ** 0.5)
        w = jax.random.uniform(keys[2 * idx], (fan_out, fan_in),
                               minval=-bound, maxval=bound, dtype=jnp.float32)
        b = jax.random.uniform(keys[2 * idx + 1], (1, fan_out),
                               minval=-bound, maxval=bound, dtype=jnp.float32)
        params.extend([w, b])
    return tuple(params)


def _reference_forward(x, params):
    w1, b1, w2, b2, w3, b3 = params
    h = jnp.maximum(x @ w1.T + b1, 0.0)
    h = jnp.maximum(h @ w2.T + b2, 0.0)
    return h @ w3.T + b3


if __name__ == "__main__":
    key = jax.random.PRNGKey(0)
    k_param, k_x = jax.random.split(key)

    original_dim = 8              # number of features before appending the mask
    batch = 8
    input_dim = original_dim * 2  # features + mask, as in the module

    params = init_params(k_param, original_dim, hidden_dim1=128, hidden_dim2=64)
    x = jax.random.normal(k_x, (batch, input_dim), dtype=jnp.float32)

    out = imputation_nn_forward(x, params)
    out = jax.block_until_ready(out)

    ref = _reference_forward(x, params)
    assert out.shape == (batch, original_dim)
    assert jnp.allclose(out, ref, atol=1e-5, rtol=1e-5), "mismatch vs reference"

    print("KERNEL_OK")
</pallas_src>

<mosaic_0001>
module attributes {stable_mosaic.version = 11 : i64} {
  func.func @_mlp_kernel(%arg0: i32, %arg1: memref<128x16xf32, #tpu.memory_space<vmem>>, %arg2: memref<128x16xf32, #tpu.memory_space<vmem>>, %arg3: memref<1x128xf32, #tpu.memory_space<vmem>>, %arg4: memref<64x128xf32, #tpu.memory_space<vmem>>, %arg5: memref<1x64xf32, #tpu.memory_space<vmem>>, %arg6: memref<8x64xf32, #tpu.memory_space<vmem>>, %arg7: memref<1x8xf32, #tpu.memory_space<vmem>>, %arg8: memref<128x8xf32, #tpu.memory_space<vmem>>) attributes {dimension_semantics = [#tpu.dimension_semantics<parallel>], iteration_bounds = array<i64: 1>, scalar_prefetch = 0 : i64, scratch_operands = 0 : i64, tpu.core_type = #tpu.core_type<tc>, window_params = [{transform_indices = @transform_0, window_bounds = array<i64: 128, 16>}, {pipeline_mode = #tpu.pipeline_mode<synchronous>, transform_indices = @transform_1, window_bounds = array<i64: 128, 16>}, {pipeline_mode = #tpu.pipeline_mode<synchronous>, transform_indices = @transform_2, window_bounds = array<i64: 1, 128>}, {pipeline_mode = #tpu.pipeline_mode<synchronous>, transform_indices = @transform_3, window_bounds = array<i64: 64, 128>}, {pipeline_mode = #tpu.pipeline_mode<synchronous>, transform_indices = @transform_4, window_bounds = array<i64: 1, 64>}, {pipeline_mode = #tpu.pipeline_mode<synchronous>, transform_indices = @transform_5, window_bounds = array<i64: 8, 64>}, {pipeline_mode = #tpu.pipeline_mode<synchronous>, transform_indices = @transform_6, window_bounds = array<i64: 1, 8>}, {transform_indices = @transform_7, window_bounds = array<i64: 128, 8>}]} {
    %c0 = arith.constant 0 : index
    %c0_0 = arith.constant 0 : index
    %0 = vector.load %arg1[%c0, %c0_0] : memref<128x16xf32, #tpu.memory_space<vmem>>, vector<128x16xf32>
    %c0_1 = arith.constant 0 : index
    %c0_2 = arith.constant 0 : index
    %1 = vector.load %arg2[%c0_1, %c0_2] : memref<128x16xf32, #tpu.memory_space<vmem>>, vector<128x16xf32>
    %cst = arith.constant dense<0.000000e+00> : vector<128x128xf32>
    %2 = tpu.matmul %0, %1, %cst {dimension_numbers = #tpu.dot_dimension_numbers<[1], [1], [0], [0], [0, 0, 1, 0], [], []>} : vector<128x16xf32>, vector<128x16xf32>, vector<128x128xf32> -> vector<128x128xf32>
    %c0_3 = arith.constant 0 : index
    %c0_4 = arith.constant 0 : index
    %3 = vector.load %arg3[%c0_3, %c0_4] : memref<1x128xf32, #tpu.memory_space<vmem>>, vector<1x128xf32>
    %4 = vector.broadcast %3 : vector<1x128xf32> to vector<128x128xf32>
    %5 = arith.addf %2, %4 : vector<128x128xf32>
    %cst_5 = arith.constant 0.000000e+00 : f32
    %6 = vector.broadcast %cst_5 : f32 to vector<128x128xf32>
    %7 = arith.maximumf %5, %6 : vector<128x128xf32>
    %c0_6 = arith.constant 0 : index
    %c0_7 = arith.constant 0 : index
    %8 = vector.load %arg4[%c0_6, %c0_7] : memref<64x128xf32, #tpu.memory_space<vmem>>, vector<64x128xf32>
    %cst_8 = arith.constant dense<0.000000e+00> : vector<128x64xf32>
    %9 = tpu.matmul %7, %8, %cst_8 {dimension_numbers = #tpu.dot_dimension_numbers<[1], [1], [0], [0], [0, 0, 1, 0], [], []>} : vector<128x128xf32>, vector<64x128xf32>, vector<128x64xf32> -> vector<128x64xf32>
    %c0_9 = arith.constant 0 : index
    %c0_10 = arith.constant 0 : index
    %10 = vector.load %arg5[%c0_9, %c0_10] : memref<1x64xf32, #tpu.memory_space<vmem>>, vector<1x64xf32>
    %11 = vector.broadcast %10 : vector<1x64xf32> to vector<128x64xf32>
    %12 = arith.addf %9, %11 : vector<128x64xf32>
    %cst_11 = arith.constant 0.000000e+00 : f32
    %13 = vector.broadcast %cst_11 : f32 to vector<128x64xf32>
    %14 = arith.maximumf %12, %13 : vector<128x64xf32>
    %c0_12 = arith.constant 0 : index
    %c0_13 = arith.constant 0 : index
    %15 = vector.load %arg6[%c0_12, %c0_13] : memref<8x64xf32, #tpu.memory_space<vmem>>, vector<8x64xf32>
    %cst_14 = arith.constant dense<0.000000e+00> : vector<128x8xf32>
    %16 = tpu.matmul %14, %15, %cst_14 {dimension_numbers = #tpu.dot_dimension_numbers<[1], [1], [0], [0], [0, 0, 1, 0], [], []>} : vector<128x64xf32>, vector<8x64xf32>, vector<128x8xf32> -> vector<128x8xf32>
    %c0_15 = arith.constant 0 : index
    %c0_16 = arith.constant 0 : index
    %17 = vector.load %arg7[%c0_15, %c0_16] : memref<1x8xf32, #tpu.memory_space<vmem>>, vector<1x8xf32>
    %18 = vector.broadcast %17 : vector<1x8xf32> to vector<128x8xf32>
    %19 = arith.addf %16, %18 : vector<128x8xf32>
    %c0_17 = arith.constant 0 : index
    %c0_18 = arith.constant 0 : index
    %20 = vector.load %arg8[%c0_17, %c0_18] : memref<128x8xf32, #tpu.memory_space<vmem>>, vector<128x8xf32>
    tpu.vector_store %arg8[%c0_17, %c0_18], %19 {strides = array<i32>} : memref<128x8xf32, #tpu.memory_space<vmem>>, vector<128x8xf32>,
    return
  }
  func.func @transform_0(%arg0: i32) -> (i32, i32) {
    %c0_i32 = arith.constant 0 : i32
    %c0_i32_0 = arith.constant 0 : i32
    return %arg0, %c0_i32 : i32, i32
  }
  func.func @transform_1(%arg0: i32) -> (i32, i32) {
    %c0_i32 = arith.constant 0 : i32
    %c0_i32_0 = arith.constant 0 : i32
    %c0_i32_1 = arith.constant 0 : i32
    return %c0_i32, %c0_i32_0 : i32, i32
  }
  func.func @transform_2(%arg0: i32) -> (i32, i32) {
    %c0_i32 = arith.constant 0 : i32
    %c0_i32_0 = arith.constant 0 : i32
    %c0_i32_1 = arith.constant 0 : i32
    return %c0_i32, %c0_i32_0 : i32, i32
  }
  func.func @transform_3(%arg0: i32) -> (i32, i32) {
    %c0_i32 = arith.constant 0 : i32
    %c0_i32_0 = arith.constant 0 : i32
    %c0_i32_1 = arith.constant 0 : i32
    return %c0_i32, %c0_i32_0 : i32, i32
  }
  func.func @transform_4(%arg0: i32) -> (i32, i32) {
    %c0_i32 = arith.constant 0 : i32
    %c0_i32_0 = arith.constant 0 : i32
    %c0_i32_1 = arith.constant 0 : i32
    return %c0_i32, %c0_i32_0 : i32, i32
  }
  func.func @transform_5(%arg0: i32) -> (i32, i32) {
    %c0_i32 = arith.constant 0 : i32
    %c0_i32_0 = arith.constant 0 : i32
    %c0_i32_1 = arith.constant 0 : i32
    return %c0_i32, %c0_i32_0 : i32, i32
  }
  func.func @transform_6(%arg0: i32) -> (i32, i32) {
    %c0_i32 = arith.constant 0 : i32
    %c0_i32_0 = arith.constant 0 : i32
    %c0_i32_1 = arith.constant 0 : i32
    return %c0_i32, %c0_i32_0 : i32, i32
  }
  func.func @transform_7(%arg0: i32) -> (i32, i32) {
    %c0_i32 = arith.constant 0 : i32
    %c0_i32_0 = arith.constant 0 : i32
    return %arg0, %c0_i32 : i32, i32
  }
}

</mosaic_0001>

<bundles_post_ra>
// kernel: imputation_nn_forward.1
= control target key start
LH: loop header
LB: loop body
LE: loop exit
PB: predicated region body
PF: predicated region fallthrough
CT: control target
= control target key end

     0   :  { %12 = vsyncpa [#allocation3], 0  ;;  %vm66_vm0 = vcmask 130048   ;;  %vm508_vm1 = vcmask 523264   ;;  %vm705_vm2 = vcmask 64512   ;;  %s1270_s0 = inlined_call_operand.vmem [shape: f32[8,16], index: 0, kind: input, shape index: {}]   ;;  %s1271_s1 = inlined_call_operand.vmem [shape: f32[128,16], index: 1, kind: input, shape index: {}]   ;;  %s1272_s2 = inlined_call_operand.vmem [shape: f32[1,128], index: 2, kind: input, shape index: {}]   ;;  %s1273_s3 = inlined_call_operand.vmem [shape: f32[64,128], index: 3, kind: input, shape index: {}]   ;;  %s1274_s4 = inlined_call_operand.vmem [shape: f32[1,64], index: 4, kind: input, shape index: {}]   ;;  %s1275_s5 = inlined_call_operand.vmem [shape: f32[8,64], index: 5, kind: input, shape index: {}]   ;;  %s1276_s6 = inlined_call_operand.vmem [shape: f32[1,8], index: 6, kind: input, shape index: {}]   ;;  %s1277_s7 = inlined_call_operand.hbm [shape: f32[8,8], index: 7, kind: output, shape index: {}]  }
   0x1   :  { %v58_v0 = vld [vmem:[%s1271_s1 + $0x78] sm:$0xff]  ;;  %v57_v1 = vld [vmem:[%s1271_s1 + $0x70] sm:$0xff]  ;;  %v56_v2 = vld [vmem:[%s1271_s1 + $0x68] sm:$0xff] }
   0x2   :  { %863 = vmatprep.subr.msk.mxu0 %vm66_vm0, %v58_v0  ;;  %v27_v3 = vld [vmem:[%s1270_s0] sm:$0xff]  ;;  %v331_v5 = vld [vmem:[%s1273_s3 + $0x38] sm:$0xff]  ;;  %v330_v6 = vld [vmem:[%s1273_s3 + $0x30] sm:$0xff] }
   0x3   :  { %864 = vmatpush3.xpose.msk.msra.mxu0 %vm66_vm0, %v58_v0  ;;  %895 = vmatprep.mubr.msk.f32.mxu0 %vm66_vm0, %v27_v3  ;;  %v55_v4 = vld [vmem:[%s1271_s1 + $0x60] sm:$0xff]  ;;  %v54_v7 = vld [vmem:[%s1271_s1 + $0x58] sm:$0xff]  ;;  %v329_v8 = vld [vmem:[%s1273_s3 + $0x28] sm:$0xff] }
   0x4   :  { %865 = vmatprep.subr.msk.mxu0 %vm66_vm0, %v57_v1  ;;  %919 = vmatprep.subr.mxu1 %v331_v5  ;;  %v53_v9 = vld [vmem:[%s1271_s1 + $0x50] sm:$0xff]  ;;  %v328_v10 = vld [vmem:[%s1273_s3 + $0x20] sm:$0xff]  ;;  %v52_v11 = vld [vmem:[%s1271_s1 + $0x48] sm:$0xff] }
   0x5   :  { %920 = vmatpush3.xpose.msra.mxu1 %v331_v5  ;;  %v327_v12 = vld [vmem:[%s1273_s3 + $0x18] sm:$0xff]  ;;  %v51_v13 = vld [vmem:[%s1271_s1 + $0x40] sm:$0xff]  ;;  %v326_v14 = vld [vmem:[%s1273_s3 + $0x10] sm:$0xff] }
   0x6   :  { %921 = vmatprep.subr.mxu1 %v330_v6  ;;  %v50_v15 = vld [vmem:[%s1271_s1 + $0x38] sm:$0xff]  ;;  %v49_v16 = vld [vmem:[%s1271_s1 + $0x30] sm:$0xff]  ;;  %v48_v17 = vld [vmem:[%s1271_s1 + $0x28] sm:$0xff] }
   0x7   :  { %866 = vmatpush3.xpose.msk.msra.mxu0 %vm66_vm0, %v57_v1  ;;  %v47_v18 = vld [vmem:[%s1271_s1 + $0x20] sm:$0xff]  ;;  %v46_v19 = vld [vmem:[%s1271_s1 + $0x18] sm:$0xff]  ;;  %v45_v20 = vld [vmem:[%s1271_s1 + $0x10] sm:$0xff] }
   0x8   :  { %867 = vmatprep.subr.msk.mxu0 %vm66_vm0, %v56_v2  ;;  %v44_v21 = vld [vmem:[%s1271_s1 + $0x8] sm:$0xff]  ;;  %v43_v22 = vld [vmem:[%s1271_s1] sm:$0xff]  ;;  %v29_v24 = vld [vmem:[%s1270_s0 + $0x10] sm:$0xff] }
   0x9   :  { %922 = vmatpush3.xpose.msra.mxu1 %v330_v6  ;;  %v28_v23 = vld [vmem:[%s1270_s0 + $0x8] sm:$0xff]  ;;  %v30_v25 = vld [vmem:[%s1270_s0 + $0x18] sm:$0xff]  ;;  %v31_v26 = vld [vmem:[%s1270_s0 + $0x20] sm:$0xff] }
   0xa   :  { %923 = vmatprep.subr.mxu1 %v329_v8  ;;  %v32_v27 = vld [vmem:[%s1270_s0 + $0x28] sm:$0xff]  ;;  %v33_v28 = vld [vmem:[%s1270_s0 + $0x30] sm:$0xff]  ;;  %v34_v29 = vld [vmem:[%s1270_s0 + $0x38] sm:$0xff] }
   0xb   :  { %868 = vmatpush3.xpose.msk.msra.mxu0 %vm66_vm0, %v56_v2  ;;  %v35_v30 = vld [vmem:[%s1270_s0 + $0x40] sm:$0xff]  ;;  %v36_v31 = vld [vmem:[%s1270_s0 + $0x48] sm:$0xff]  ;;  %v37_v32 = vld [vmem:[%s1270_s0 + $0x50] sm:$0xff] }
   0xc   :  { %869 = vmatprep.subr.msk.mxu0 %vm66_vm0, %v55_v4  ;;  %v38_v33 = vld [vmem:[%s1270_s0 + $0x58] sm:$0xff]  ;;  %v39_v34 = vld [vmem:[%s1270_s0 + $0x60] sm:$0xff]  ;;  %v40_v35 = vld [vmem:[%s1270_s0 + $0x68] sm:$0xff] }
   0xd   :  { %924 = vmatpush3.xpose.msra.mxu1 %v329_v8  ;;  %v41_v36 = vld [vmem:[%s1270_s0 + $0x70] sm:$0xff]  ;;  %v42_v37 = vld [vmem:[%s1270_s0 + $0x78] sm:$0xff]  ;;  %v325_v38 = vld [vmem:[%s1273_s3 + $0x8] sm:$0xff] }
   0xe   :  { %925 = vmatprep.subr.mxu1 %v328_v10  ;;  %v324_v39 = vld [vmem:[%s1273_s3] sm:$0xff] }
   0xf   :  { %870 = vmatpush3.xpose.msk.msra.mxu0 %vm66_vm0, %v55_v4  ;;  %v500_v40 = vld [vmem:[%s1275_s5] sm:$0xff] }
  0x10   :  { %871 = vmatprep.subr.msk.mxu0 %vm66_vm0, %v54_v7  ;;  %v738_v41 = vld [vmem:[%s1272_s2] ss:$0 sm:$0xff] }
  0x11   :  { %926 = vmatpush3.xpose.msra.mxu1 %v328_v10 }
  0x12   :  { %927 = vmatprep.subr.mxu1 %v327_v12 }
  0x13   :  { %872 = vmatpush3.xpose.msk.msra.mxu0 %vm66_vm0, %v54_v7 }
  0x14   :  { %873 = vmatprep.subr.msk.mxu0 %vm66_vm0, %v53_v9 }
  0x15   :  { %928 = vmatpush3.xpose.msra.mxu1 %v327_v12 }
  0x16   :  { %929 = vmatprep.subr.mxu1 %v326_v14 }
  0x17   :  { %874 = vmatpush3.xpose.msk.msra.mxu0 %vm66_vm0, %v53_v9 }
  0x18   :  { %875 = vmatprep.subr.msk.mxu0 %vm66_vm0, %v52_v11 }
  0x19   :  { %930 = vmatpush3.xpose.msra.mxu1 %v326_v14 }
  0x1a   :  { %931 = vmatprep.subr.mxu1 %v325_v38 }
  0x1b   :  { %876 = vmatpush3.xpose.msk.msra.mxu0 %vm66_vm0, %v52_v11 }
  0x1c   :  { %877 = vmatprep.subr.msk.mxu0 %vm66_vm0, %v51_v13 }
  0x1d   :  { %932 = vmatpush3.xpose.msra.mxu1 %v325_v38 }
  0x1e   :  { %933 = vmatprep.subr.mxu1 %v324_v39 }
  0x1f   :  { %878 = vmatpush3.xpose.msk.msra.mxu0 %vm66_vm0, %v51_v13 }
  0x20   :  { %879 = vmatprep.subr.msk.mxu0 %vm66_vm0, %v50_v15 }
  0x21   :  { %934 = vmatpush3.xpose.msra.mxu1 %v324_v39 }
  0x22   :  { %959 = vmatprep.subr.msk.mxu1 %vm508_vm1, %v500_v40 }
  0x23   :  { %880 = vmatpush3.xpose.msk.msra.mxu0 %vm66_vm0, %v50_v15 }
  0x24   :  { %881 = vmatprep.subr.msk.mxu0 %vm66_vm0, %v49_v16 }
  0x27   :  { %882 = vmatpush3.xpose.msk.msra.mxu0 %vm66_vm0, %v49_v16 }
  0x28   :  { %883 = vmatprep.subr.msk.mxu0 %vm66_vm0, %v48_v17 }
  0x2b   :  { %884 = vmatpush3.xpose.msk.msra.mxu0 %vm66_vm0, %v48_v17 }
  0x2c   :  { %885 = vmatprep.subr.msk.mxu0 %vm66_vm0, %v47_v18 }
  0x2f   :  { %886 = vmatpush3.xpose.msk.msra.mxu0 %vm66_vm0, %v47_v18 }
  0x30   :  { %887 = vmatprep.subr.msk.mxu0 %vm66_vm0, %v46_v19 }
  0x33   :  { %888 = vmatpush3.xpose.msk.msra.mxu0 %vm66_vm0, %v46_v19 }
  0x34   :  { %889 = vmatprep.subr.msk.mxu0 %vm66_vm0, %v45_v20 }
  0x37   :  { %890 = vmatpush3.xpose.msk.msra.mxu0 %vm66_vm0, %v45_v20 }
  0x38   :  { %891 = vmatprep.subr.msk.mxu0 %vm66_vm0, %v44_v21 }
  0x3b   :  { %892 = vmatpush3.xpose.msk.msra.mxu0 %vm66_vm0, %v44_v21 }
  0x3c   :  { %893 = vmatprep.subr.msk.mxu0 %vm66_vm0, %v43_v22 }
  0x3f   :  { %894 = vmatpush3.xpose.msk.msra.mxu0 %vm66_vm0, %v43_v22 }
  0x42   :  { %896 = vmatmul.mubr.msk.f32.vlgmr.msra.gmra.mxu0 %vm66_vm0, %v28_v23 }
  0x43   :  { %898 = vmatprep.mubr.msk.f32.mxu0 %vm66_vm0, %v29_v24 }
  0x46   :  { %899 = vmatmul.mubr.msk.f32.gmra.mxu0 %vm66_vm0, %v30_v25 }
  0x47   :  { %901 = vmatprep.mubr.msk.f32.mxu0 %vm66_vm0, %v31_v26  ;;  %v771_v26 = vld [vmem:[%s1274_s4] ss:$0 sm:$0xff] }
  0x4a   :  { %902 = vmatmul.mubr.msk.f32.gmra.mxu0 %vm66_vm0, %v32_v27 }
  0x4b   :  { %904 = vmatprep.mubr.msk.f32.mxu0 %vm66_vm0, %v33_v28 }
  0x4e   :  { %905 = vmatmul.mubr.msk.f32.gmra.mxu0 %vm66_vm0, %v34_v29 }
  0x4f   :  { %907 = vmatprep.mubr.msk.f32.mxu0 %vm66_vm0, %v35_v30 }
  0x52   :  { %908 = vmatmul.mubr.msk.f32.gmra.mxu0 %vm66_vm0, %v36_v31 }
  0x53   :  { %910 = vmatprep.mubr.msk.f32.mxu0 %vm66_vm0, %v37_v32 }
  0x56   :  { %911 = vmatmul.mubr.msk.f32.gmra.mxu0 %vm66_vm0, %v38_v33 }
  0x57   :  { %913 = vmatprep.mubr.msk.f32.mxu0 %vm66_vm0, %v39_v34 }
  0x5a   :  { %914 = vmatmul.mubr.msk.f32.gmra.mxu0 %vm66_vm0, %v40_v35 }
  0x5b   :  { %916 = vmatprep.mubr.msk.f32.mxu0 %vm66_vm0, %v41_v36 }
  0x5e   :  { %917 = vmatmul.mubr.msk.f32.gmra.mxu0 %vm66_vm0, %v42_v37 }
 0x102   :  { %v897_v42 = vpop.f32.mrf.mxu0 }
 0x103   :  { %v235_v43 = vadd.f32 %v897_v42, %v738_v41 }
 0x104   :  { %v229_v44 = vpop.f32.mrf.mxu0 }
 0x105   :  { %v230_v45 = vadd.f32 %v738_v41, %v229_v44  ;;  %v309_v48 = vmax.f32 %v235_v43, 0.0 }
 0x106   :  { %v900_v46 = vpop.f32.mrf.mxu0 }
 0x107   :  { %v308_v47 = vmax.f32 %v230_v45, 0.0  ;;  %v245_v49 = vadd.f32 %v900_v46, %v738_v41 }
 0x108   :  { %v239_v50 = vpop.f32.mrf.mxu0 }
 0x109   :  { %v240_v51 = vadd.f32 %v738_v41, %v239_v50  ;;  %935 = vmatprep.mubr.f32.mxu1 %v308_v47  ;;  %v311_v54 = vmax.f32 %v245_v49, 0.0 }
 0x10a   :  { %v903_v52 = vpop.f32.mrf.mxu0  ;;  %936 = vmatmul.mubr.f32.vlgmr.msra.gmra.mxu1 %v309_v48 }
 0x10b   :  { %v310_v53 = vmax.f32 %v240_v51, 0.0  ;;  %960 = vmatpush3.xpose.msk.msra.mxu1 %vm508_vm1, %v500_v40  ;;  %v255_v55 = vadd.f32 %v903_v52, %v738_v41 }
 0x10c   :  { %v249_v56 = vpop.f32.mrf.mxu0 }
 0x10d   :  { %v250_v57 = vadd.f32 %v738_v41, %v249_v56  ;;  %938 = vmatprep.mubr.f32.mxu1 %v310_v53  ;;  %v313_v60 = vmax.f32 %v255_v55, 0.0 }
 0x10e   :  { %v906_v58 = vpop.f32.mrf.mxu0  ;;  %939 = vmatmul.mubr.f32.gmra.mxu1 %v311_v54 }
 0x10f   :  { %v312_v59 = vmax.f32 %v250_v57, 0.0  ;;  %v265_v61 = vadd.f32 %v906_v58, %v738_v41 }
 0x110   :  { %v259_v62 = vpop.f32.mrf.mxu0 }
 0x111   :  { %v260_v63 = vadd.f32 %v738_v41, %v259_v62  ;;  %941 = vmatprep.mubr.f32.mxu1 %v312_v59  ;;  %v315_v2 = vmax.f32 %v265_v61, 0.0 }
 0x112   :  { %v909_v0 = vpop.f32.mrf.mxu0  ;;  %942 = vmatmul.mubr.f32.gmra.mxu1 %v313_v60 }
 0x113   :  { %v314_v1 = vmax.f32 %v260_v63, 0.0  ;;  %v275_v3 = vadd.f32 %v909_v0, %v738_v41 }
 0x114   :  { %v269_v4 = vpop.f32.mrf.mxu0 }
 0x115   :  { %v270_v5 = vadd.f32 %v738_v41, %v269_v4  ;;  %944 = vmatprep.mubr.f32.mxu1 %v314_v1  ;;  %v317_v8 = vmax.f32 %v275_v3, 0.0 }
 0x116   :  { %v912_v6 = vpop.f32.mrf.mxu0  ;;  %945 = vmatmul.mubr.f32.gmra.mxu1 %v315_v2 }
 0x117   :  { %v316_v7 = vmax.f32 %v270_v5, 0.0  ;;  %v285_v9 = vadd.f32 %v912_v6, %v738_v41 }
 0x118   :  { %v279_v10 = vpop.f32.mrf.mxu0 }
 0x119   :  { %v280_v11 = vadd.f32 %v738_v41, %v279_v10  ;;  %947 = vmatprep.mubr.f32.mxu1 %v316_v7  ;;  %v319_v14 = vmax.f32 %v285_v9, 0.0 }
 0x11a   :  { %v915_v12 = vpop.f32.mrf.mxu0  ;;  %948 = vmatmul.mubr.f32.gmra.mxu1 %v317_v8 }
 0x11b   :  { %v318_v13 = vmax.f32 %v280_v11, 0.0  ;;  %v295_v15 = vadd.f32 %v915_v12, %v738_v41  ;;  %v772_v11 = vld [vmem:[%s1276_s6] ss:$0 sm:$0xff] }
 0x11c   :  { %v289_v16 = vpop.f32.mrf.mxu0 }
 0x11d   :  { %v290_v17 = vadd.f32 %v738_v41, %v289_v16  ;;  %950 = vmatprep.mubr.f32.mxu1 %v318_v13  ;;  %v321_v20 = vmax.f32 %v295_v15, 0.0 }
 0x11e   :  { %v918_v18 = vpop.f32.mrf.mxu0  ;;  %951 = vmatmul.mubr.f32.gmra.mxu1 %v319_v14 }
 0x11f   :  { %v320_v19 = vmax.f32 %v290_v17, 0.0  ;;  %v305_v21 = vadd.f32 %v918_v18, %v738_v41 }
 0x120   :  { %v299_v22 = vpop.f32.mrf.mxu0 }
 0x121   :  { %v300_v23 = vadd.f32 %v738_v41, %v299_v22  ;;  %953 = vmatprep.mubr.f32.mxu1 %v320_v19  ;;  %v323_v25 = vmax.f32 %v305_v21, 0.0 }
 0x122   :  { %954 = vmatmul.mubr.f32.gmra.mxu1 %v321_v20 }
 0x123   :  { %v322_v24 = vmax.f32 %v300_v23, 0.0 }
 0x125   :  { %956 = vmatprep.mubr.f32.mxu1 %v322_v24 }
 0x126   :  { %957 = vmatmul.mubr.f32.gmra.mxu1 %v323_v25 }
 0x1ca   :  { %v937_v27 = vpop.f32.mrf.mxu1 }
 0x1cb   :  { %v411_v28 = vadd.f32 %v937_v27, %v771_v26 }
 0x1cc   :  { %v405_v29 = vpop.f32.mrf.mxu1 }
 0x1cd   :  { %v406_v30 = vadd.f32 %v771_v26, %v405_v29  ;;  %v485_v33 = vmax.f32 %v411_v28, 0.0 }
 0x1ce   :  { %v940_v31 = vpop.f32.mrf.mxu1 }
 0x1cf   :  { %v484_v32 = vmax.f32 %v406_v30, 0.0  ;;  %v421_v34 = vadd.f32 %v940_v31, %v771_v26 }
 0x1d0   :  { %v415_v35 = vpop.f32.mrf.mxu1 }
 0x1d1   :  { %v416_v36 = vadd.f32 %v771_v26, %v415_v35  ;;  %961 = vmatprep.mubr.msk.f32.mxu1 %vm508_vm1, %v484_v32  ;;  %v487_v39 = vmax.f32 %v421_v34, 0.0 }
 0x1d2   :  { %v943_v37 = vpop.f32.mrf.mxu1  ;;  %962 = vmatmul.mubr.msk.f32.vlgmr.msra.gmra.mxu1 %vm508_vm1, %v485_v33 }
 0x1d3   :  { %v486_v38 = vmax.f32 %v416_v36, 0.0  ;;  %v431_v40 = vadd.f32 %v943_v37, %v771_v26 }
 0x1d4   :  { %v425_v41 = vpop.f32.mrf.mxu1 }
 0x1d5   :  { %v426_v42 = vadd.f32 %v771_v26, %v425_v41  ;;  %964 = vmatprep.mubr.msk.f32.mxu1 %vm508_vm1, %v486_v38  ;;  %v489_v45 = vmax.f32 %v431_v40, 0.0 }
 0x1d6   :  { %v946_v43 = vpop.f32.mrf.mxu1  ;;  %965 = vmatmul.mubr.msk.f32.gmra.mxu1 %vm508_vm1, %v487_v39 }
 0x1d7   :  { %v488_v44 = vmax.f32 %v426_v42, 0.0  ;;  %v441_v46 = vadd.f32 %v946_v43, %v771_v26 }
 0x1d8   :  { %v435_v47 = vpop.f32.mrf.mxu1 }
 0x1d9   :  { %v436_v48 = vadd.f32 %v771_v26, %v435_v47  ;;  %967 = vmatprep.mubr.msk.f32.mxu1 %vm508_vm1, %v488_v44  ;;  %v491_v51 = vmax.f32 %v441_v46, 0.0 }
 0x1da   :  { %v949_v49 = vpop.f32.mrf.mxu1  ;;  %968 = vmatmul.mubr.msk.f32.gmra.mxu1 %vm508_vm1, %v489_v45 }
 0x1db   :  { %v490_v50 = vmax.f32 %v436_v48, 0.0  ;;  %v451_v52 = vadd.f32 %v949_v49, %v771_v26 }
 0x1dc   :  { %v445_v53 = vpop.f32.mrf.mxu1 }
 0x1dd   :  { %v446_v54 = vadd.f32 %v771_v26, %v445_v53  ;;  %970 = vmatprep.mubr.msk.f32.mxu1 %vm508_vm1, %v490_v50  ;;  %v493_v57 = vmax.f32 %v451_v52, 0.0 }
 0x1de   :  { %v952_v55 = vpop.f32.mrf.mxu1  ;;  %971 = vmatmul.mubr.msk.f32.gmra.mxu1 %vm508_vm1, %v491_v51 }
 0x1df   :  { %v492_v56 = vmax.f32 %v446_v54, 0.0  ;;  %v461_v58 = vadd.f32 %v952_v55, %v771_v26 }
 0x1e0   :  { %v455_v59 = vpop.f32.mrf.mxu1 }
 0x1e1   :  { %v456_v60 = vadd.f32 %v771_v26, %v455_v59  ;;  %973 = vmatprep.mubr.msk.f32.mxu1 %vm508_vm1, %v492_v56  ;;  %v495_v63 = vmax.f32 %v461_v58, 0.0 }
 0x1e2   :  { %v955_v61 = vpop.f32.mrf.mxu1  ;;  %974 = vmatmul.mubr.msk.f32.gmra.mxu1 %vm508_vm1, %v493_v57 }
 0x1e3   :  { %v494_v62 = vmax.f32 %v456_v60, 0.0  ;;  %v471_v0 = vadd.f32 %v955_v61, %v771_v26 }
 0x1e4   :  { %v465_v1 = vpop.f32.mrf.mxu1 }
 0x1e5   :  { %v466_v2 = vadd.f32 %v771_v26, %v465_v1  ;;  %976 = vmatprep.mubr.msk.f32.mxu1 %vm508_vm1, %v494_v62  ;;  %v497_v5 = vmax.f32 %v471_v0, 0.0 }
 0x1e6   :  { %v958_v3 = vpop.f32.mrf.mxu1  ;;  %977 = vmatmul.mubr.msk.f32.gmra.mxu1 %vm508_vm1, %v495_v63 }
 0x1e7   :  { %v496_v4 = vmax.f32 %v466_v2, 0.0  ;;  %v481_v6 = vadd.f32 %v958_v3, %v771_v26 }
 0x1e8   :  { %v475_v7 = vpop.f32.mrf.mxu1 }
 0x1e9   :  { %v476_v8 = vadd.f32 %v771_v26, %v475_v7  ;;  %979 = vmatprep.mubr.msk.f32.mxu1 %vm508_vm1, %v496_v4  ;;  %v499_v10 = vmax.f32 %v481_v6, 0.0 }
 0x1ea   :  { %980 = vmatmul.mubr.msk.f32.gmra.mxu1 %vm508_vm1, %v497_v5 }
 0x1eb   :  { %v498_v9 = vmax.f32 %v476_v8, 0.0 }
 0x1ed   :  { %982 = vmatprep.mubr.msk.f32.mxu1 %vm508_vm1, %v498_v9 }
 0x1ee   :  { %983 = vmatmul.mubr.msk.f32.gmra.mxu1 %vm508_vm1, %v499_v10 }
 0x292   :  { %v963_v12 = vpop.f32.mrf.mxu1 }
 0x293   :  { %v632_v13 = vadd.f32 %v963_v12, %v772_v11 }
 0x294   :  { %v626_v14 = vpop.f32.mrf.mxu1 }
 0x295   :  { %707 = vst.msk [vmem:[#allocation2 + $0x8] sm:$0xff] %vm705_vm2, %v632_v13  ;;  %v627_v15 = vadd.f32 %v772_v11, %v626_v14 }
 0x296   :  { %v966_v16 = vpop.f32.mrf.mxu1 }
 0x297   :  { %706 = vst.msk [vmem:[#allocation2] sm:$0xff] %vm705_vm2, %v627_v15  ;;  %v642_v17 = vadd.f32 %v966_v16, %v772_v11 }
 0x298   :  { %v636_v18 = vpop.f32.mrf.mxu1 }
 0x299   :  { %709 = vst.msk [vmem:[#allocation2 + $0x18] sm:$0xff] %vm705_vm2, %v642_v17  ;;  %v637_v19 = vadd.f32 %v772_v11, %v636_v18 }
 0x29a   :  { %v969_v20 = vpop.f32.mrf.mxu1 }
 0x29b   :  { %708 = vst.msk [vmem:[#allocation2 + $0x10] sm:$0xff] %vm705_vm2, %v637_v19  ;;  %v652_v21 = vadd.f32 %v969_v20, %v772_v11 }
 0x29c   :  { %v646_v22 = vpop.f32.mrf.mxu1 }
 0x29d   :  { %711 = vst.msk [vmem:[#allocation2 + $0x28] sm:$0xff] %vm705_vm2, %v652_v21  ;;  %v647_v23 = vadd.f32 %v772_v11, %v646_v22 }
 0x29e   :  { %v972_v24 = vpop.f32.mrf.mxu1 }
 0x29f   :  { %710 = vst.msk [vmem:[#allocation2 + $0x20] sm:$0xff] %vm705_vm2, %v647_v23  ;;  %v662_v25 = vadd.f32 %v972_v24, %v772_v11 }
 0x2a0   :  { %v656_v26 = vpop.f32.mrf.mxu1 }
 0x2a1   :  { %713 = vst.msk [vmem:[#allocation2 + $0x38] sm:$0xff] %vm705_vm2, %v662_v25  ;;  %v657_v27 = vadd.f32 %v772_v11, %v656_v26 }
 0x2a2   :  { %v975_v28 = vpop.f32.mrf.mxu1 }
 0x2a3   :  { %712 = vst.msk [vmem:[#allocation2 + $0x30] sm:$0xff] %vm705_vm2, %v657_v27  ;;  %v672_v29 = vadd.f32 %v975_v28, %v772_v11 }
 0x2a4   :  { %v666_v30 = vpop.f32.mrf.mxu1 }
 0x2a5   :  { %715 = vst.msk [vmem:[#allocation2 + $0x48] sm:$0xff] %vm705_vm2, %v672_v29  ;;  %v667_v31 = vadd.f32 %v772_v11, %v666_v30 }
 0x2a6   :  { %v978_v32 = vpop.f32.mrf.mxu1 }
 0x2a7   :  { %714 = vst.msk [vmem:[#allocation2 + $0x40] sm:$0xff] %vm705_vm2, %v667_v31  ;;  %v682_v33 = vadd.f32 %v978_v32, %v772_v11 }
 0x2a8   :  { %v676_v34 = vpop.f32.mrf.mxu1 }
 0x2a9   :  { %717 = vst.msk [vmem:[#allocation2 + $0x58] sm:$0xff] %vm705_vm2, %v682_v33  ;;  %v677_v35 = vadd.f32 %v772_v11, %v676_v34 }
 0x2aa   :  { %v981_v36 = vpop.f32.mrf.mxu1 }
 0x2ab   :  { %716 = vst.msk [vmem:[#allocation2 + $0x50] sm:$0xff] %vm705_vm2, %v677_v35  ;;  %v692_v37 = vadd.f32 %v981_v36, %v772_v11 }
 0x2ac   :  { %v686_v38 = vpop.f32.mrf.mxu1 }
 0x2ad   :  { %719 = vst.msk [vmem:[#allocation2 + $0x68] sm:$0xff] %vm705_vm2, %v692_v37  ;;  %v687_v39 = vadd.f32 %v772_v11, %v686_v38 }
 0x2ae   :  { %v984_v40 = vpop.f32.mrf.mxu1 }
 0x2af   :  { %718 = vst.msk [vmem:[#allocation2 + $0x60] sm:$0xff] %vm705_vm2, %v687_v39  ;;  %v702_v41 = vadd.f32 %v984_v40, %v772_v11 }
 0x2b0   :  { %v696_v42 = vpop.f32.mrf.mxu1 }
 0x2b1   :  { %721 = vst.msk [vmem:[#allocation2 + $0x78] sm:$0xff] %vm705_vm2, %v702_v41  ;;  %v697_v43 = vadd.f32 %v772_v11, %v696_v42 }
 0x2b3   :  { %720 = vst.msk [vmem:[#allocation2 + $0x70] sm:$0xff] %vm705_vm2, %v697_v43 }
 0x2b4   :  { %726 = vsyncadd [#allocation3], 1920  ;;  %s1010_s6 = smov [#allocation2]  }
 0x2b5   :  { %s727_s13 = sshll.u32 %s1010_s6, 4  ;;  %s728_s13 = int_to_ptr.vmem [resolvable:$true] %s727_s13 }
 0x2b6   :  { %s988_s14 = scalar_lea.vmem %s728_s13, 128  ;;  %s992_s15 = scalar_lea.vmem %s728_s13, 2048 }
 0x2b7   :  { %p989_p0 = scmp.ne.s32.totalorder %s728_s13, %s988_s14  ;;  %p993_p1 = scmp.lt.s32.totalorder %s728_s13, %s728_s13 }
 0x2b8   :  { %p994_p2 = scmp.lt.s32.totalorder %s992_s15, %s988_s14 }
 0x2ba   :  { %p995_p3 = por %p994_p2, %p993_p1 }
 0x2bc   :  { %p996_p4 = pnand %p995_p3, %p989_p0 }
 0x2be   :  { %999 = shalt.err (!%p996_p4)
}
 0x2bf   :  { %s1011_s16 = smov 128   ;;  %s1012_s17 = smov 8  }
 0x2c0   :  { %733 = dma.vmem_to_hbm [thread:$0]  %s728_s13, 128, %s1277_s7, [#allocation3], %s1011_s16, %s1011_s16, %s1012_s17  }
 0x2c1   :  { %1008 = dma.done.wait [#allocation3], 2048  }
 0x2c2   :  { %1009 = vsyncadd [#allocation3], 4294965248 }
 0x2c3   :  { %737 = vsyncpa [#allocation3], 1 }

</bundles_post_ra>
